<compile_context>
chip_gen: v6e
topology: v6e:2x2x1
jax: 0.10.0
libtpu: 0.0.40
codegen_flags: <defaults>
</compile_context>

<pallas_src>
import functools
import math

import jax
import jax.numpy as jnp
from jax import lax
from jax.experimental import pallas as pl
from jax.experimental.pallas import tpu as pltpu


_NEG_BIG = -1e30  # finite "minus infinity" (only ever compared/subtracted vs finite values)


def _supcon_kernel(q_ref, k_ref, labq_ref, labk_ref, out_ref,
                   m_sc, l_sc, ps_sc, pm_sc, *,
                   inv_t, out_scale, n_valid, n_pad, block_q, block_k, lanes):
    qi = pl.program_id(0)
    ki = pl.program_id(1)
    tq, tk, L = block_q, block_k, lanes
    n_slices = tk // L

    @pl.when(ki == 0)
    def _():
        m_sc[...] = jnp.full(m_sc.shape, _NEG_BIG, m_sc.dtype)
        l_sc[...] = jnp.zeros_like(l_sc)
        ps_sc[...] = jnp.zeros_like(ps_sc)
        pm_sc[...] = jnp.zeros_like(pm_sc)

    # 1/T folded into the small [TQ, D] q tile; bf16 x bf16 -> f32 on the MXU.
    q = (q_ref[...].astype(jnp.float32) * inv_t).astype(jnp.bfloat16)
    s = lax.dot_general(q, k_ref[...], (((1,), (1,)), ((), ())),
                        preferred_element_type=jnp.float32)          # [TQ, TK] f32

    # ---- lane-wise online softmax state update (no per-step cross-lane reduce) ----
    # Running max over the RAW logits (always finite; reference also maxes over all
    # columns including the diagonal, and the LSE is shift-exact anyway).
    m_step = s[:, 0:L]
    for c in range(1, n_slices):
        m_step = jnp.maximum(m_step, s[:, c * L:(c + 1) * L])
    m_prev = m_sc[...]
    m_new = jnp.maximum(m_prev, m_step)                               # [TQ, L]
    alpha = jnp.exp(m_prev - m_new)          # exp(-1e30 - finite) == 0 on the first step

    row_ids = qi * tq + lax.broadcasted_iota(jnp.int32, (tq, 1), 0)   # [TQ, 1]
    lane_ids = lax.broadcasted_iota(jnp.int32, (1, L), 1)             # [1, L]
    labq = labq_ref[...]                                              # [TQ, 1] int32
    labk = labk_ref[...]                                              # [1, TK] int32

    col_base = ki * tk
    has_pad = n_pad > n_valid
    last_tile_start = n_pad - tk

    l_add = jnp.zeros((tq, L), jnp.float32)
    ps_add = jnp.zeros((tq, L), jnp.float32)
    pm_add = jnp.zeros((tq, L), jnp.float32)
    for c in range(n_slices):
        s_c = s[:, c * L:(c + 1) * L]                                 # [TQ, L]
        col_c = col_base + c * L + lane_ids                           # [1, L] global col ids
        keep = row_ids != col_c                                       # diag exclusion
        # Padded columns can only appear in lane-slices that reach past n_valid in
        # the last k tile; statically skip the compare everywhere else.
        if has_pad and (last_tile_start + (c + 1) * L > n_valid):
            keep = jnp.logical_and(keep, col_c < n_valid)
        labk_c = labk[:, c * L:(c + 1) * L]                           # [1, L]
        # Padded labels are -1 and real labels >= 0, so padded columns never match.
        pos = jnp.logical_and(labq == labk_c, keep)
        e = jnp.exp(s_c - m_new)
        l_add = l_add + jnp.where(keep, e, 0.0)
        ps_add = ps_add + jnp.where(pos, s_c, 0.0)
        pm_add = pm_add + pos.astype(jnp.float32)

    l_sc[...] = alpha * l_sc[...] + l_add
    m_sc[...] = m_new
    ps_sc[...] = ps_sc[...] + ps_add
    pm_sc[...] = pm_sc[...] + pm_add

    @pl.when(ki == pl.num_programs(1) - 1)
    def _():
        m_lane = m_sc[...]
        m_row = jnp.max(m_lane, axis=1, keepdims=True)                # [TQ, 1]
        l_row = jnp.sum(l_sc[...] * jnp.exp(m_lane - m_row), axis=1, keepdims=True)
        lse = m_row + jnp.log(l_row)
        ps_row = jnp.sum(ps_sc[...], axis=1, keepdims=True)
        pm_row = jnp.sum(pm_sc[...], axis=1, keepdims=True)
        # sum_j m_ij * log_prob_ij / sum_j m_ij == (sum m*s - sum(m)*LSE) / sum(m).
        # Rows with zero positives give NaN, matching the PyTorch reference; padded
        # rows are sliced off in the wrapper.
        out_ref[...] = out_scale * (ps_row - pm_row * lse) / pm_row


def _round_up(x, m):
    return (x + m - 1) // m * m


def _vmem_bytes_estimate(blk_q, blk_k, d_pad):
    lanes = min(128, blk_k)
    feat = 2 * (blk_q + blk_k) * d_pad * 2          # double-buffered bf16 q/k tiles
    s_tile = 2 * blk_q * blk_k * 4                  # f32 logits tile (+ headroom)
    tmp = 20 * blk_q * 128 * 4                      # per-slice temporaries
    scr = 4 * blk_q * lanes * 4                     # lane-wise accumulators
    return feat + s_tile + tmp + scr + (2 << 20)


def supcon_loss(features, labels, temperature=0.07, base_temperature=0.07,
                block_q=None, block_k=None):
    """Pallas implementation of SupConLoss.forward (contrast_mode='all', labels given)."""
    if features.ndim > 3:
        features = features.reshape(features.shape[0], features.shape[1], -1)
    bsz, n_views, dim = features.shape
    n_total = n_views * bsz

    # --- glue (plain JAX): torch.max(labels, 1)[1] and view-major concat ---
    lab = jnp.argmax(labels, axis=1).astype(jnp.int32)
    lab_n = jnp.tile(lab, n_views)
    contrast = jnp.transpose(features, (1, 0, 2)).reshape(n_total, dim)

    d_pad = _round_up(dim, 128)

    try:
        vmem_cap = int(pltpu.get_tpu_info().vmem_capacity_bytes)
    except Exception:
        vmem_cap = 64 * 1024 * 1024   # conservative (v7x-sized) fallback

    # --- tile sizing ---
    auto_q = block_q is None
    if auto_q:
        if n_total <= 128:
            block_q = _round_up(max(n_total, 8), 8)
        elif n_total <= 512:
            block_q = 128                       # >= 2 q tiles -> both v7x TensorCores busy
        else:
            block_q = 256
    if block_k is None:
        n_res = _round_up(n_total, block_q)
        if _vmem_bytes_estimate(block_q, n_res, d_pad) <= int(0.45 * vmem_cap):
            block_k = n_res                     # resident K: fetched into VMEM exactly once
        else:
            big_vmem = vmem_cap >= (96 << 20)   # v5e/v6e-class (128 MiB) vs v7x (64 MiB)
            block_k = 1024 if big_vmem else 512
            if auto_q and big_vmem and n_total >= 2048:
                block_q = 512
    assert block_q % 8 == 0, block_q
    assert (block_k % 128 == 0) or (block_k <= 128 and block_k % 8 == 0), block_k

    # Auto-chosen blocks always have block_q | block_k, so this is max(block), not an
    # lcm blow-up.  User-supplied blocks may pad more.
    n_pad = _round_up(n_total, math.lcm(block_q, block_k))
    lanes = min(128, block_k)
    # TODO(synk): very large feature dims would need an extra contraction split over D
    # (the [tile, d_pad] feature tiles are kept whole here).

    # bf16 features, zero-padded (zero rows/cols keep dot products exact; padded columns
    # are masked in-kernel, padded rows are sliced off below).  Labels padded with -1.
    feat_p = jnp.zeros((n_pad, d_pad), jnp.bfloat16).at[:n_total, :dim].set(
        contrast.astype(jnp.bfloat16))
    lab_p = jnp.full((n_pad,), -1, jnp.int32).at[:n_total].set(lab_n)
    lab_rows = lab_p.reshape(n_pad, 1)
    lab_cols = lab_p.reshape(1, n_pad)

    grid = (n_pad // block_q, n_pad // block_k)

    need = _vmem_bytes_estimate(block_q, block_k, d_pad)
    vmem_limit = min(int(0.9 * vmem_cap), max(2 * need, 48 << 20))
    vmem_limit = max(vmem_limit, need)

    kernel = functools.partial(
        _supcon_kernel,
        inv_t=float(1.0 / temperature),
        out_scale=float(-(temperature / base_temperature)),
        n_valid=n_total, n_pad=n_pad,
        block_q=block_q, block_k=block_k, lanes=lanes)

    per_anchor = pl.pallas_call(
        kernel,
        out_shape=jax.ShapeDtypeStruct((n_pad, 1), jnp.float32),
        grid_spec=pltpu.PrefetchScalarGridSpec(
            num_scalar_prefetch=0,
            grid=grid,
            in_specs=[
                pl.BlockSpec((block_q, d_pad), lambda qi, ki: (qi, 0)),   # anchor rows (bf16)
                pl.BlockSpec((block_k, d_pad), lambda qi, ki: (ki, 0)),   # contrast cols (bf16)
                pl.BlockSpec((block_q, 1), lambda qi, ki: (qi, 0)),       # row labels
                pl.BlockSpec((1, block_k), lambda qi, ki: (0, ki)),       # col labels
            ],
            out_specs=pl.BlockSpec((block_q, 1), lambda qi, ki: (qi, 0)),
            scratch_shapes=[pltpu.VMEM((block_q, lanes), jnp.float32)] * 4,
        ),
        compiler_params=pltpu.CompilerParams(
            dimension_semantics=("parallel", "arbitrary"),
            vmem_limit_bytes=int(vmem_limit)),
    )(feat_p, feat_p, lab_rows, lab_cols)

    # loss.view(anchor_count, batch_size).mean() == mean over all real anchors
    return jnp.sum(per_anchor[:n_total, 0]) / n_total


def _reference_supcon(features, labels, temperature=0.07, base_temperature=0.07,
                      simulate_bf16=False):
    """Pure-JAX port of the PyTorch forward.  simulate_bf16=True pre-rounds the
    features / scaled anchors to bf16 (what the kernel's MXU sees) for a tight check."""
    bsz, n_views, dim = features.shape
    lab = jnp.argmax(labels, axis=1)
    mask = (lab[:, None] == lab[None, :]).astype(jnp.float32)
    contrast = jnp.transpose(features, (1, 0, 2)).reshape(n_views * bsz, dim)
    if simulate_bf16:
        k = contrast.astype(jnp.bfloat16).astype(jnp.float32)
        q = (k * (1.0 / temperature)).astype(jnp.bfloat16).astype(jnp.float32)
        adc = q @ k.T
    else:
        adc = (contrast @ contrast.T) / temperature
    logits = adc - jnp.max(adc, axis=1, keepdims=True)
    mask = jnp.tile(mask, (n_views, n_views))
    logits_mask = 1.0 - jnp.eye(n_views * bsz, dtype=jnp.float32)
    mask = mask * logits_mask
    exp_logits = jnp.exp(logits) * logits_mask
    log_prob = logits - jnp.log(exp_logits.sum(1, keepdims=True))
    mean_log_prob_pos = (mask * log_prob).sum(1) / mask.sum(1)
    loss = -(temperature / base_temperature) * mean_log_prob_pos
    return loss.reshape(n_views, bsz).mean()


if __name__ == "__main__":
    key = jax.random.PRNGKey(0)
    k1, k2, k3, k4 = jax.random.split(key, 4)

    def run_case(feats, labels, **kw):
        loss = jax.block_until_ready(supcon_loss(feats, labels, **kw))
        ref_bf = jax.block_until_ready(_reference_supcon(feats, labels, simulate_bf16=True))
        ref_32 = jax.block_until_ready(_reference_supcon(feats, labels))
        assert bool(jnp.isfinite(loss)), loss
        # tight check vs. the same-semantics reference on bf16-rounded inputs
        assert jnp.allclose(loss, ref_bf, atol=2e-3, rtol=2e-3), (loss, ref_bf)
        # loose check vs. full-f32 reference (bf16 MXU rounding is the only difference)
        assert jnp.allclose(loss, ref_32, atol=6e-2, rtol=6e-2), (loss, ref_32)
        return loss

    # --- Test 1: tiny single-tile case (bsz=8, n_views=2, dim=32) ---
    # SupConLoss is used with L2-normalized features (temperature 0.07); unnormalized
    # inputs overflow the reference's exp/log path.
    feats1 = jax.random.normal(k1, (8, 2, 32), dtype=jnp.float32)
    feats1 = feats1 / jnp.linalg.norm(feats1, axis=-1, keepdims=True)
    labels1 = jax.random.normal(k2, (8, 3), dtype=jnp.float32)
    run_case(feats1, labels1)

    # --- Test 2: auto tiling -> resident K, multi q-tile, padding, multi lane-slice
    #     (N = 400 -> padded 512, grid (4, 1)) ---
    feats2 = jax.random.normal(k3, (200, 2, 64), dtype=jnp.float32)
    feats2 = feats2 / jnp.linalg.norm(feats2, axis=-1, keepdims=True)
    labels2 = jax.random.normal(k4, (200, 5), dtype=jnp.float32)
    run_case(feats2, labels2)

    # --- Test 3: forced streaming K (grid (4, 2)) exercising the cross-step online
    #     softmax / rescale path and the last-tile padding mask ---
    run_case(feats2, labels2, block_q=128, block_k=256)

    print("KERNEL_OK")
</pallas_src>

<mosaic_0001>
module attributes {stable_mosaic.version = 11 : i64} {
  func.func @_supcon_kernel(%arg0: i32, %arg1: i32, %arg2: memref<16x128xbf16, #tpu.memory_space<vmem>>, %arg3: memref<16x128xbf16, #tpu.memory_space<vmem>>, %arg4: memref<16x1xi32, #tpu.memory_space<vmem>>, %arg5: memref<1x16xi32, #tpu.memory_space<vmem>>, %arg6: memref<16x1xf32, #tpu.memory_space<vmem>>, %arg7: memref<16x16xf32, #tpu.memory_space<vmem>>, %arg8: memref<16x16xf32, #tpu.memory_space<vmem>>, %arg9: memref<16x16xf32, #tpu.memory_space<vmem>>, %arg10: memref<16x16xf32, #tpu.memory_space<vmem>>) attributes {dimension_semantics = [#tpu.dimension_semantics<parallel>, #tpu.dimension_semantics<arbitrary>], iteration_bounds = array<i64: 1, 1>, scalar_prefetch = 0 : i64, scratch_operands = 4 : i64, tpu.core_type = #tpu.core_type<tc>, window_params = [{transform_indices = @transform_0, window_bounds = array<i64: 16, 128>}, {transform_indices = @transform_1, window_bounds = array<i64: 16, 128>}, {transform_indices = @transform_2, window_bounds = array<i64: 16, 1>}, {transform_indices = @transform_3, window_bounds = array<i64: 1, 16>}, {transform_indices = @transform_4, window_bounds = array<i64: 16, 1>}]} {
    %c0_i32 = arith.constant 0 : i32
    %0 = arith.cmpi eq, %arg1, %c0_i32 : i32
    %1 = arith.extui %0 : i1 to i32
    %c0_i32_0 = arith.constant 0 : i32
    %2 = arith.cmpi ne, %1, %c0_i32_0 : i32
    scf.if %2 {
      %cst_34 = arith.constant -1.000000e+30 : f32
      %60 = vector.broadcast %cst_34 : f32 to vector<16x16xf32>
      %c0_35 = arith.constant 0 : index
      %c0_36 = arith.constant 0 : index
      %61 = vector.load %arg7[%c0_35, %c0_36] : memref<16x16xf32, #tpu.memory_space<vmem>>, vector<16x16xf32>
      tpu.vector_store %arg7[%c0_35, %c0_36], %60 {strides = array<i32>} : memref<16x16xf32, #tpu.memory_space<vmem>>, vector<16x16xf32>,
      %cst_37 = arith.constant 0.000000e+00 : f32
      %62 = vector.broadcast %cst_37 : f32 to vector<16x16xf32>
      %c0_38 = arith.constant 0 : index
      %c0_39 = arith.constant 0 : index
      %63 = vector.load %arg8[%c0_38, %c0_39] : memref<16x16xf32, #tpu.memory_space<vmem>>, vector<16x16xf32>
      tpu.vector_store %arg8[%c0_38, %c0_39], %62 {strides = array<i32>} : memref<16x16xf32, #tpu.memory_space<vmem>>, vector<16x16xf32>,
      %cst_40 = arith.constant 0.000000e+00 : f32
      %64 = vector.broadcast %cst_40 : f32 to vector<16x16xf32>
      %c0_41 = arith.constant 0 : index
      %c0_42 = arith.constant 0 : index
      %65 = vector.load %arg9[%c0_41, %c0_42] : memref<16x16xf32, #tpu.memory_space<vmem>>, vector<16x16xf32>
      tpu.vector_store %arg9[%c0_41, %c0_42], %64 {strides = array<i32>} : memref<16x16xf32, #tpu.memory_space<vmem>>, vector<16x16xf32>,
      %cst_43 = arith.constant 0.000000e+00 : f32
      %66 = vector.broadcast %cst_43 : f32 to vector<16x16xf32>
      %c0_44 = arith.constant 0 : index
      %c0_45 = arith.constant 0 : index
      %67 = vector.load %arg10[%c0_44, %c0_45] : memref<16x16xf32, #tpu.memory_space<vmem>>, vector<16x16xf32>
      tpu.vector_store %arg10[%c0_44, %c0_45], %66 {strides = array<i32>} : memref<16x16xf32, #tpu.memory_space<vmem>>, vector<16x16xf32>,
    } else {
    }
    %c0 = arith.constant 0 : index
    %c0_1 = arith.constant 0 : index
    %3 = vector.load %arg2[%c0, %c0_1] : memref<16x128xbf16, #tpu.memory_space<vmem>>, vector<16x128xbf16>
    %4 = arith.extf %3 : vector<16x128xbf16> to vector<16x128xf32>
    %cst = arith.constant 14.2857141 : f32
    %5 = vector.broadcast %cst : f32 to vector<16x128xf32>
    %6 = arith.mulf %4, %5 : vector<16x128xf32>
    %7 = arith.truncf %6 : vector<16x128xf32> to vector<16x128xbf16>
    %c0_2 = arith.constant 0 : index
    %c0_3 = arith.constant 0 : index
    %8 = vector.load %arg3[%c0_2, %c0_3] : memref<16x128xbf16, #tpu.memory_space<vmem>>, vector<16x128xbf16>
    %cst_4 = arith.constant dense<0.000000e+00> : vector<16x16xf32>
    %9 = tpu.matmul %7, %8, %cst_4 {dimension_numbers = #tpu.dot_dimension_numbers<[1], [1], [0], [0], [0, 0, 1, 0], [], []>} : vector<16x128xbf16>, vector<16x128xbf16>, vector<16x16xf32> -> vector<16x16xf32>
    %c0_5 = arith.constant 0 : index
    %c0_6 = arith.constant 0 : index
    %10 = vector.load %arg7[%c0_5, %c0_6] : memref<16x16xf32, #tpu.memory_space<vmem>>, vector<16x16xf32>
    %11 = arith.maximumf %10, %9 : vector<16x16xf32>
    %12 = arith.subf %10, %11 : vector<16x16xf32>
    %13 = math.exp %12 : vector<16x16xf32>
    %c16_i32 = arith.constant 16 : i32
    %14 = arith.muli %arg0, %c16_i32 : i32
    %15 = tpu.iota {dimensions = array<i32: 0>} : vector<16x1xi32>
    %16 = vector.broadcast %14 : i32 to vector<16x1xi32>
    %17 = arith.addi %16, %15 : vector<16x1xi32>
    %18 = tpu.iota {dimensions = array<i32: 1>} : vector<1x16xi32>
    %c0_7 = arith.constant 0 : index
    %c0_8 = arith.constant 0 : index
    %19 = vector.load %arg4[%c0_7, %c0_8] : memref<16x1xi32, #tpu.memory_space<vmem>>, vector<16x1xi32>
    %c0_9 = arith.constant 0 : index
    %c0_10 = arith.constant 0 : index
    %20 = vector.load %arg5[%c0_9, %c0_10] : memref<1x16xi32, #tpu.memory_space<vmem>>, vector<1x16xi32>
    %c16_i32_11 = arith.constant 16 : i32
    %21 = arith.muli %arg1, %c16_i32_11 : i32
    %cst_12 = arith.constant 0.000000e+00 : f32
    %22 = vector.broadcast %cst_12 : f32 to vector<16x16xf32>
    %cst_13 = arith.constant 0.000000e+00 : f32
    %23 = vector.broadcast %cst_13 : f32 to vector<16x16xf32>
    %cst_14 = arith.constant 0.000000e+00 : f32
    %24 = vector.broadcast %cst_14 : f32 to vector<16x16xf32>
    %c0_i32_15 = arith.constant 0 : i32
    %25 = arith.addi %21, %c0_i32_15 : i32
    %26 = vector.broadcast %25 : i32 to vector<1x16xi32>
    %27 = arith.addi %26, %18 : vector<1x16xi32>
    %28 = vector.broadcast %17 : vector<16x1xi32> to vector<16x16xi32>
    %29 = vector.broadcast %27 : vector<1x16xi32> to vector<16x16xi32>
    %30 = arith.cmpi ne, %28, %29 : vector<16x16xi32>
    %31 = vector.broadcast %19 : vector<16x1xi32> to vector<16x16xi32>
    %32 = vector.broadcast %20 : vector<1x16xi32> to vector<16x16xi32>
    %33 = arith.cmpi eq, %31, %32 : vector<16x16xi32>
    %34 = arith.andi %33, %30 : vector<16x16xi1>
    %35 = arith.subf %9, %11 : vector<16x16xf32>
    %36 = math.exp %35 : vector<16x16xf32>
    %cst_16 = arith.constant 0.000000e+00 : f32
    %37 = vector.broadcast %cst_16 : f32 to vector<16x16xf32>
    %38 = arith.select %30, %36, %37 : vector<16x16xi1>, vector<16x16xf32>
    %39 = arith.addf %22, %38 : vector<16x16xf32>
    %cst_17 = arith.constant 0.000000e+00 : f32
    %40 = vector.broadcast %cst_17 : f32 to vector<16x16xf32>
    %41 = arith.select %34, %9, %40 : vector<16x16xi1>, vector<16x16xf32>
    %42 = arith.addf %23, %41 : vector<16x16xf32>
    %43 = arith.extui %34 : vector<16x16xi1> to vector<16x16xi32>
    %44 = arith.sitofp %43 : vector<16x16xi32> to vector<16x16xf32>
    %45 = arith.addf %24, %44 : vector<16x16xf32>
    %c0_18 = arith.constant 0 : index
    %c0_19 = arith.constant 0 : index
    %46 = vector.load %arg8[%c0_18, %c0_19] : memref<16x16xf32, #tpu.memory_space<vmem>>, vector<16x16xf32>
    %47 = arith.mulf %13, %46 : vector<16x16xf32>
    %48 = arith.addf %47, %39 : vector<16x16xf32>
    %c0_20 = arith.constant 0 : index
    %c0_21 = arith.constant 0 : index
    %49 = vector.load %arg8[%c0_20, %c0_21] : memref<16x16xf32, #tpu.memory_space<vmem>>, vector<16x16xf32>
    tpu.vector_store %arg8[%c0_20, %c0_21], %48 {strides = array<i32>} : memref<16x16xf32, #tpu.memory_space<vmem>>, vector<16x16xf32>,
    %c0_22 = arith.constant 0 : index
    %c0_23 = arith.constant 0 : index
    %50 = vector.load %arg7[%c0_22, %c0_23] : memref<16x16xf32, #tpu.memory_space<vmem>>, vector<16x16xf32>
    tpu.vector_store %arg7[%c0_22, %c0_23], %11 {strides = array<i32>} : memref<16x16xf32, #tpu.memory_space<vmem>>, vector<16x16xf32>,
    %c0_24 = arith.constant 0 : index
    %c0_25 = arith.constant 0 : index
    %51 = vector.load %arg9[%c0_24, %c0_25] : memref<16x16xf32, #tpu.memory_space<vmem>>, vector<16x16xf32>
    %52 = arith.addf %51, %42 : vector<16x16xf32>
    %c0_26 = arith.constant 0 : index
    %c0_27 = arith.constant 0 : index
    %53 = vector.load %arg9[%c0_26, %c0_27] : memref<16x16xf32, #tpu.memory_space<vmem>>, vector<16x16xf32>
    tpu.vector_store %arg9[%c0_26, %c0_27], %52 {strides = array<i32>} : memref<16x16xf32, #tpu.memory_space<vmem>>, vector<16x16xf32>,
    %c0_28 = arith.constant 0 : index
    %c0_29 = arith.constant 0 : index
    %54 = vector.load %arg10[%c0_28, %c0_29] : memref<16x16xf32, #tpu.memory_space<vmem>>, vector<16x16xf32>
    %55 = arith.addf %54, %45 : vector<16x16xf32>
    %c0_30 = arith.constant 0 : index
    %c0_31 = arith.constant 0 : index
    %56 = vector.load %arg10[%c0_30, %c0_31] : memref<16x16xf32, #tpu.memory_space<vmem>>, vector<16x16xf32>
    tpu.vector_store %arg10[%c0_30, %c0_31], %55 {strides = array<i32>} : memref<16x16xf32, #tpu.memory_space<vmem>>, vector<16x16xf32>,
    %c0_i32_32 = arith.constant 0 : i32
    %57 = arith.cmpi eq, %arg1, %c0_i32_32 : i32
    %58 = arith.extui %57 : i1 to i32
    %c0_i32_33 = arith.constant 0 : i32
    %59 = arith.cmpi ne, %58, %c0_i32_33 : i32
    scf.if %59 {
      %c0_34 = arith.constant 0 : index
      %c0_35 = arith.constant 0 : index
      %60 = vector.load %arg7[%c0_34, %c0_35] : memref<16x16xf32, #tpu.memory_space<vmem>>, vector<16x16xf32>
      %cst_36 = arith.constant dense<0xFF800000> : vector<16xf32>
      %61 = vector.multi_reduction <maximumf>, %60, %cst_36 [1] : vector<16x16xf32> to vector<16xf32>
      %62 = vector.shape_cast %61 : vector<16xf32> to vector<16x1xf32>
      %c0_37 = arith.constant 0 : index
      %c0_38 = arith.constant 0 : index
      %63 = vector.load %arg8[%c0_37, %c0_38] : memref<16x16xf32, #tpu.memory_space<vmem>>, vector<16x16xf32>
      %64 = vector.broadcast %62 : vector<16x1xf32> to vector<16x16xf32>
      %65 = arith.subf %60, %64 : vector<16x16xf32>
      %66 = math.exp %65 : vector<16x16xf32>
      %67 = arith.mulf %63, %66 : vector<16x16xf32>
      %cst_39 = arith.constant dense<0.000000e+00> : vector<16xf32>
      %68 = vector.multi_reduction <add>, %67, %cst_39 [1] : vector<16x16xf32> to vector<16xf32>
      %69 = vector.shape_cast %68 : vector<16xf32> to vector<16x1xf32>
      %70 = math.log %69 : vector<16x1xf32>
      %71 = arith.addf %62, %70 : vector<16x1xf32>
      %c0_40 = arith.constant 0 : index
      %c0_41 = arith.constant 0 : index
      %72 = vector.load %arg9[%c0_40, %c0_41] : memref<16x16xf32, #tpu.memory_space<vmem>>, vector<16x16xf32>
      %cst_42 = arith.constant dense<0.000000e+00> : vector<16xf32>
      %73 = vector.multi_reduction <add>, %72, %cst_42 [1] : vector<16x16xf32> to vector<16xf32>
      %74 = vector.shape_cast %73 : vector<16xf32> to vector<16x1xf32>
      %c0_43 = arith.constant 0 : index
      %c0_44 = arith.constant 0 : index
      %75 = vector.load %arg10[%c0_43, %c0_44] : memref<16x16xf32, #tpu.memory_space<vmem>>, vector<16x16xf32>
      %cst_45 = arith.constant dense<0.000000e+00> : vector<16xf32>
      %76 = vector.multi_reduction <add>, %75, %cst_45 [1] : vector<16x16xf32> to vector<16xf32>
      %77 = vector.shape_cast %76 : vector<16xf32> to vector<16x1xf32>
      %78 = arith.mulf %77, %71 : vector<16x1xf32>
      %79 = arith.subf %74, %78 : vector<16x1xf32>
      %cst_46 = arith.constant -1.000000e+00 : f32
      %80 = vector.broadcast %cst_46 : f32 to vector<16x1xf32>
      %81 = arith.mulf %80, %79 : vector<16x1xf32>
      %82 = arith.divf %81, %77 : vector<16x1xf32>
      %c0_47 = arith.constant 0 : index
      %c0_48 = arith.constant 0 : index
      %83 = vector.load %arg6[%c0_47, %c0_48] : memref<16x1xf32, #tpu.memory_space<vmem>>, vector<16x1xf32>
      tpu.vector_store %arg6[%c0_47, %c0_48], %82 {strides = array<i32>} : memref<16x1xf32, #tpu.memory_space<vmem>>, vector<16x1xf32>,
    } else {
    }
    return
  }
  func.func @transform_0(%arg0: i32, %arg1: i32) -> (i32, i32) {
    %c0_i32 = arith.constant 0 : i32
    %c0_i32_0 = arith.constant 0 : i32
    return %arg0, %c0_i32 : i32, i32
  }
  func.func @transform_1(%arg0: i32, %arg1: i32) -> (i32, i32) {
    %c0_i32 = arith.constant 0 : i32
    %c0_i32_0 = arith.constant 0 : i32
    return %arg1, %c0_i32 : i32, i32
  }
  func.func @transform_2(%arg0: i32, %arg1: i32) -> (i32, i32) {
    %c0_i32 = arith.constant 0 : i32
    %c0_i32_0 = arith.constant 0 : i32
    return %arg0, %c0_i32 : i32, i32
  }
  func.func @transform_3(%arg0: i32, %arg1: i32) -> (i32, i32) {
    %c0_i32 = arith.constant 0 : i32
    %c0_i32_0 = arith.constant 0 : i32
    return %c0_i32, %arg1 : i32, i32
  }
  func.func @transform_4(%arg0: i32, %arg1: i32) -> (i32, i32) {
    %c0_i32 = arith.constant 0 : i32
    %c0_i32_0 = arith.constant 0 : i32
    return %arg0, %c0_i32 : i32, i32
  }
}

</mosaic_0001>

<bundles_post_ra>
// kernel: tpu_custom_call.1
= control target key start
LH: loop header
LB: loop body
LE: loop exit
PB: predicated region body
PF: predicated region fallthrough
CT: control target
= control target key end

     0   :  { %vm22_vm0 = vcmask 130048   ;;  %v280_v0 = vmov 0.0   ;;  %vm281_vm1 = vmmov 0   ;;  %v282_v3 = vmov 0   ;;  %s387_s1 = inlined_call_operand.vmem [shape: bf16[16,128], index: 1, kind: input, shape index: {}]   ;;  %s388_s0 = inlined_call_operand.vmem [shape: bf16[16,128], index: 0, kind: input, shape index: {}]   ;;  %s389_s2 = inlined_call_operand.vmem [shape: s32[16,1], index: 2, kind: input, shape index: {}]   ;;  %s390_s3 = inlined_call_operand.vmem [shape: s32[1,16], index: 3, kind: input, shape index: {}]   ;;  %s391_s4 = inlined_call_operand.vmem [shape: f32[16,1], index: 4, kind: output, shape index: {}]  }
   0x1   :  { %247 = vmatprep.subr.bf16.mxu0 %v280_v0  ;;  %v259_v1 = vld [vmem:[%s387_s1] sm:$0xff]   ;;  %249 = vmatprep.mubr.msk.bf16.mxu0 %vm281_vm1, %v280_v0  ;;  %29 = vst.msk [vmem:[#allocation5] sm:$0xff] %vm22_vm0, %v280_v0  ;;  %25 = vst.msk [vmem:[#allocation3] sm:$0xff] %vm22_vm0, %v280_v0  ;;  %v107_v7 = vld [vmem:[%s389_s2 + $0x8] sm:$0xff]  ;;  %v283_v10 = vmov -1e+30   ;;  %v98_v12 = vlaneseq }
   0x2   :  { %26 = vst.msk [vmem:[#allocation3 + $0x8] sm:$0xff] %vm22_vm0, %v280_v0  ;;  %27 = vst.msk [vmem:[#allocation4] sm:$0xff] %vm22_vm0, %v280_v0  ;;  %v242_v2 = vld [vmem:[%s388_s0] sm:$0xff]   ;;  %257 = vset.pattern.permute.xlu1 %v282_v3  ;;  %258 = vset.pattern.permute.xlu0 %v282_v3  ;;  %vm230_vm8 = vcmask 7168  }
   0x3   :  { %28 = vst.msk [vmem:[#allocation4 + $0x8] sm:$0xff] %vm22_vm0, %v280_v0  ;;  %30 = vst.msk [vmem:[#allocation5 + $0x8] sm:$0xff] %vm22_vm0, %v280_v0  ;;  %v106_v4 = vld [vmem:[%s389_s2] sm:$0xff]  ;;  %248 = vmatpush3.bf16.xpose.msra.mxu0 %v259_v1  ;;  %v243_v5 = vunpack.c.l.bf16 %v242_v2  ;;  %v244_v6 = vunpack.c.h.bf16 %v242_v2  ;;  %v99_v13 = vshrl.u32 %v98_v12, 7  ;;  %v329_v14 = vand.u32 127, %v98_v12 }
   0x4   :  { %115 = vperm.xlu1 %257, %v106_v4   ;;  %23 = vst.msk [vmem:[#allocation2] sm:$0xff] %vm22_vm0, %v283_v10  ;;  %24 = vst.msk [vmem:[#allocation2 + $0x8] sm:$0xff] %vm22_vm0, %v283_v10  ;;  %v238_v15 = vld [vmem:[%s390_s3] ss:$0 sm:$0xff] }
   0x5   :  { %v35_v8 = vmul.f32 14.285714, %v243_v5  ;;  %v36_v9 = vmul.f32 14.285714, %v244_v6  ;;  %vm112_vm2 = vcmp.ne.s32.totalorder %v99_v13, %v329_v14  ;;  %v335_v16 = vadd.s32 8, %v99_v13 }
   0x7   :  { %v37_v11 = vpack.c.bf16 %v36_v9, %v35_v8  ;;  %vm113_vm5 = vcmp.ne.s32.totalorder %v335_v16, %v329_v14 }
   0x8   :  { %118 = vperm.xlu1 %257, %v107_v7   ;;  %v165_v18 = vld [vmem:[#allocation5] sm:$0xff] }
   0x9   :  { %v159_v28 = vld [vmem:[#allocation4] sm:$0xff]  ;;  %v148_v53 = vld [vmem:[#allocation3] sm:$0xff]  ;;  %v149_v58 = vld [vmem:[#allocation3 + $0x8] sm:$0xff] }
   0xa   :  { %250 = vmatmul.mubr.bf16.vlgmr.msra.gmra.mxu0 %v37_v11  ;;  %v166_v23 = vld [vmem:[#allocation5 + $0x8] sm:$0xff]  ;;  %v160_v37 = vld [vmem:[#allocation4 + $0x8] sm:$0xff] }
   0xb   :  { %v87_v27 = vld [vmem:[#allocation2] sm:$0xff]  ;;  %v88_v34 = vld [vmem:[#allocation2 + $0x8] sm:$0xff] }
  0x7f   :  { %v116_v17 = vpop.permute.xlu1 %115 }
  0x80   :  { %vm124_vm3 = vcmp.eq.s32.totalorder %v116_v17, %v238_v15 }
  0x81   :  { %vm339_vm4 = vmand %vm124_vm3, %vm112_vm2 }
  0x82   :  { %v239_v20 = vsel %vm339_vm4, 1.0, %v280_v0 }
  0x83   :  { %v167_v21 = vadd.f32 %v239_v20, %v165_v18  ;;  %v119_v22 = vpop.permute.xlu1 %118 }
  0x84   :  { %vm125_vm6 = vcmp.eq.s32.totalorder %v119_v22, %v238_v15 }
  0x85   :  { %169 = vst.msk [vmem:[#allocation5] sm:$0xff] %vm22_vm0, %v167_v21  ;;  %vm351_vm7 = vmand %vm125_vm6, %vm113_vm5 }
  0x86   :  { %v240_v25 = vsel %vm351_vm7, 1.0, %v280_v0 }
  0x87   :  { %v168_v26 = vadd.f32 %v240_v25, %v166_v23 }
  0x89   :  { %170 = vst.msk [vmem:[#allocation5 + $0x8] sm:$0xff] %vm22_vm0, %v168_v26 }
  0x8c   :  { %v212_v10 = vld [vmem:[#allocation5] sm:$0xff] }
  0x8d   :  { %v214_v14 = vsel %vm22_vm0, %v212_v10, 0.0 }
  0x90   :  { %v213_v16 = vld [vmem:[#allocation5 + $0x8] sm:$0xff] }
  0x91   :  { %v217_v18 = vsel %vm22_vm0, %v213_v16, 0.0 }
  0xca   :  { %v80_v29 = vpop.f32.mrf.mxu0 }
  0xcb   :  { %v89_v30 = vmax.f32 %v87_v27, %v80_v29  ;;  %v138_v31 = vsel %vm339_vm4, %v80_v29, 0.0 }
  0xcc   :  { %v161_v32 = vadd.f32 %v159_v28, %v138_v31  ;;  %v251_v33 = vpop.f32.mrf.mxu0 }
  0xcd   :  { %v91_v35 = vsub.f32 %v87_v27, %v89_v30  ;;  %v128_v36 = vsub.f32 %v80_v29, %v89_v30  ;;  %157 = vst.msk [vmem:[#allocation2] sm:$0xff] %vm22_vm0, %v89_v30 }
  0xce   :  { %163 = vst.msk [vmem:[#allocation4] sm:$0xff] %vm22_vm0, %v161_v32  ;;  %v83_v38 = vpop.f32.mrf.mxu0 }
  0xcf   :  { %v93_v39 = vmul.f32 1.442695, %v91_v35  ;;  %v130_v40 = vmul.f32 1.442695, %v128_v36  ;;  %v90_v41 = vmax.f32 %v88_v34, %v83_v38  ;;  %v139_v42 = vsel %vm351_vm7, %v83_v38, 0.0 }
  0xd0   :  { %v162_v43 = vadd.f32 %v160_v37, %v139_v42  ;;  %v252_v44 = vpop.f32.mrf.mxu0 }
  0xd1   :  { %260 = vpow2.f32 %v93_v39  ;;  %v92_v45 = vsub.f32 %v88_v34, %v90_v41  ;;  %v129_v46 = vsub.f32 %v83_v38, %v90_v41  ;;  %158 = vst.msk [vmem:[#allocation2 + $0x8] sm:$0xff] %vm22_vm0, %v90_v41 }
  0xd2   :  { %262 = vpow2.f32 %v130_v40  ;;  %164 = vst.msk [vmem:[#allocation4 + $0x8] sm:$0xff] %vm22_vm0, %v162_v43 }
  0xd3   :  { %v95_v47 = vmul.f32 1.442695, %v92_v45  ;;  %v132_v48 = vmul.f32 1.442695, %v129_v46 }
  0xd4   :  { %v174_v49 = vld [vmem:[#allocation2] sm:$0xff] }
  0xd5   :  { %264 = vpow2.f32 %v95_v47  ;;  %v176_v50 = vsel %vm22_vm0, %v174_v49, -inf  ;;  %v204_v19 = vld [vmem:[#allocation4] sm:$0xff] }
  0xd6   :  { %266 = vpow2.f32 %v132_v48  ;;  %177 = vmax.xlane.f32.xlu0 %v176_v50  ;;  %v206_v20 = vsel %vm22_vm0, %v204_v19, 0.0 }
  0xd8   :  { %v175_v51 = vld [vmem:[#allocation2 + $0x8] sm:$0xff] }
  0xd9   :  { %v179_v52 = vsel %vm22_vm0, %v175_v51, -inf  ;;  %v205_v21 = vld [vmem:[#allocation4 + $0x8] sm:$0xff] }
  0xda   :  { %180 = vmax.xlane.f32.xlu0 %v179_v52  ;;  %v209_v22 = vsel %vm22_vm0, %v205_v21, 0.0 }
  0xde   :  { %v261_v54 = vpop.eup %260 }
  0xdf   :  { %v263_v55 = vpop.eup %262  ;;  %v150_v56 = vmul.f32 %v261_v54, %v148_v53 }
  0xe0   :  { %v134_v57 = vsel %vm112_vm2, %v263_v55, 0.0 }
  0xe1   :  { %v152_v59 = vadd.f32 %v150_v56, %v134_v57 }
  0xe2   :  { %v265_v60 = vpop.eup %264 }
  0xe3   :  { %v267_v61 = vpop.eup %266  ;;  %155 = vst.msk [vmem:[#allocation3] sm:$0xff] %vm22_vm0, %v152_v59  ;;  %v151_v62 = vmul.f32 %v265_v60, %v149_v58 }
  0xe4   :  { %v135_v63 = vsel %vm113_vm5, %v267_v61, 0.0 }
  0xe5   :  { %v153_v0 = vadd.f32 %v151_v62, %v135_v63 }
  0xe7   :  { %156 = vst.msk [vmem:[#allocation3 + $0x8] sm:$0xff] %vm22_vm0, %v153_v0 }
  0xea   :  { %v182_v8 = vld [vmem:[#allocation3] sm:$0xff] }
  0xee   :  { %v183_v13 = vld [vmem:[#allocation3 + $0x8] sm:$0xff] }
 0x15f   :  { %v178_v1 = vpop.xlane.xlu0 %177 }
 0x160   :  { %v184_v2 = vsub.f32 %v174_v49, %v178_v1 }
 0x162   :  { %v186_v3 = vmul.f32 1.442695, %v184_v2 }
 0x163   :  { %v181_v4 = vpop.xlane.xlu0 %180 }
 0x164   :  { %268 = vpow2.f32 %v186_v3  ;;  %v185_v5 = vsub.f32 %v175_v51, %v181_v4 }
 0x166   :  { %v188_v6 = vmul.f32 1.442695, %v185_v5 }
 0x168   :  { %270 = vpow2.f32 %v188_v6 }
 0x171   :  { %v269_v7 = vpop.eup %268 }
 0x172   :  { %v190_v9 = vmul.f32 %v269_v7, %v182_v8 }
 0x174   :  { %v192_v11 = vsel %vm22_vm0, %v190_v9, 0.0 }
 0x175   :  { %v271_v12 = vpop.eup %270  ;;  %193 = vadd.xlane.f32.xlu0 %v192_v11 }
 0x176   :  { %v191_v15 = vmul.f32 %v271_v12, %v183_v13 }
 0x178   :  { %v195_v17 = vsel %vm22_vm0, %v191_v15, 0.0 }
 0x179   :  { %215 = vadd.xlane.f32.xlu0 %v214_v14  ;;  %196 = vadd.xlane.f32.xlu1 %v195_v17 }
 0x17d   :  { %218 = vadd.xlane.f32.xlu0 %v217_v18 }
 0x181   :  { %207 = vadd.xlane.f32.xlu0 %v206_v20 }
 0x185   :  { %210 = vadd.xlane.f32.xlu0 %v209_v22 }
 0x1fe   :  { %v194_v23 = vpop.xlane.xlu0 %193 }
 0x1ff   :  { %272 = vlog2.f32 %v194_v23 }
 0x202   :  { %v197_v24 = vpop.xlane.xlu1 %196  ;;  %v216_v25 = vpop.xlane.xlu0 %215 }
 0x203   :  { %274 = vlog2.f32 %v197_v24 }
 0x204   :  { %276 = vrcp.f32 %v216_v25 }
 0x206   :  { %v219_v26 = vpop.xlane.xlu0 %218 }
 0x207   :  { %278 = vrcp.f32 %v219_v26 }
 0x20a   :  { %v208_v32 = vpop.xlane.xlu0 %207 }
 0x20c   :  { %v273_v27 = vpop.eup %272 }
 0x20d   :  { %v199_v28 = vmul.f32 0.6931472, %v273_v27 }
 0x20e   :  { %v211_v40 = vpop.xlane.xlu0 %210 }
 0x20f   :  { %v202_v29 = vadd.f32 %v199_v28, %v178_v1 }
 0x210   :  { %v275_v30 = vpop.eup %274 }
 0x211   :  { %v220_v31 = vmul.f32 %v216_v25, %v202_v29  ;;  %v201_v33 = vmul.f32 0.6931472, %v275_v30  ;;  %v277_v35 = vpop.eup %276 }
 0x213   :  { %v222_v34 = vsub.f32 %v208_v32, %v220_v31  ;;  %v203_v36 = vadd.f32 %v201_v33, %v181_v4 }
 0x214   :  { %v279_v43 = vpop.eup %278 }
 0x215   :  { %v224_v37 = vmul.f32 -1.0, %v222_v34  ;;  %v221_v38 = vmul.f32 %v219_v26, %v203_v36 }
 0x217   :  { %v227_v39 = vmul.f32 %v277_v35, %v224_v37  ;;  %v223_v41 = vsub.f32 %v211_v40, %v221_v38 }
 0x219   :  { %231 = vst.msk [vmem:[%s391_s4] sm:$0xff] %vm230_vm8, %v227_v39  ;;  %v225_v42 = vmul.f32 -1.0, %v223_v41 }
 0x21b   :  { %v229_v44 = vmul.f32 %v279_v43, %v225_v42 }
 0x21d   :  { %232 = vst.msk [vmem:[%s391_s4 + $0x8] sm:$0xff] %vm230_vm8, %v229_v44 }

</bundles_post_ra>
